<compile_context>
chip_gen: v7x
topology: tpu7x:2x2x1
jax: 0.10.0
libtpu: 0.0.40
codegen_flags: <defaults>
</compile_context>

<pallas_src>
import functools

import jax
import jax.numpy as jnp
import numpy as np
from jax import lax
from jax.experimental import pallas as pl
from jax.experimental.pallas import tpu as pltpu


# --------------------------------- kernel ------------------------------------

def _tcn_kernel(x_ref, *args, layers, K, tile_t, halo, nt):
    """Fused TCN forward for one (batch, time-tile) grid step.

    x_ref : (1, C0, halo + T_pad)  causally left-padded input (full time axis)
    args  : per-layer weight refs [w1s, b1, w2s, b2, (wd, bd)]..., then out_ref
            w1s : (Cout, K*Cin)   tap-stacked conv weights
            b*  : (Cout, 1)
            wd  : (Cout, Cin)     1x1 downsample conv (only when Cin != Cout)
    out   : (1, C_last, tile_t)
    `layers` is a static tuple of (Cin, Cout, dilation, has_downsample).
    """
    o_ref = args[-1]
    wrefs = args[:-1]

    if nt == 1:
        start = 0
    else:
        start = pl.program_id(1) * tile_t
        if tile_t % 128 == 0:
            start = pl.multiple_of(start, 128)

    # Input window covering original time positions [start - halo, start+tile_t).
    # Positions < 0 hold the wrapper's causal zero padding.
    a = x_ref[0, :, pl.ds(start, tile_t + halo)]
    lookback = halo                    # columns of `a` preceding the tile start

    def mask_negative(v, lb):
        # Zero the columns whose original time position is < 0: they stand in
        # for the causal zero padding seen by the *next* conv / block.
        pos = (start - lb) + lax.broadcasted_iota(jnp.int32, v.shape, 1)
        return jnp.where(pos >= 0, v, 0.0)

    wi = 0
    for (cin, cout, d, has_ds) in layers:
        p = (K - 1) * d
        w1 = wrefs[wi][...]
        b1 = wrefs[wi + 1][...]
        w2 = wrefs[wi + 2][...]
        b2 = wrefs[wi + 3][...]
        wi += 4
        if has_ds:
            wd = wrefs[wi][...]
            bd = wrefs[wi + 1][...]
            wi += 2

        w_in = a.shape[-1]

        # ---- conv1: valid dilated conv on the window, K taps fused ----------
        n1 = w_in - p
        s1 = jnp.concatenate([a[:, j * d: j * d + n1] for j in range(K)], axis=0)
        h1 = jnp.dot(w1, s1.astype(w1.dtype),
                     preferred_element_type=jnp.float32) + b1
        h1 = jnp.maximum(h1, 0.0)
        if lookback - p > 0:
            h1 = mask_negative(h1, lookback - p)   # causal zero pad for conv2

        # ---- conv2: same, on h1 ----------------------------------------------
        n2 = n1 - p
        s2 = jnp.concatenate([h1[:, j * d: j * d + n2] for j in range(K)], axis=0)
        h2 = jnp.dot(w2, s2.astype(w2.dtype),
                     preferred_element_type=jnp.float32) + b2
        h2 = jnp.maximum(h2, 0.0)

        # ---- residual + final ReLU -------------------------------------------
        xin = a[:, 2 * p:]                          # block input, aligned with h2
        if has_ds:
            res = jnp.dot(wd, xin.astype(wd.dtype),
                          preferred_element_type=jnp.float32) + bd
        else:
            res = xin
        out = jnp.maximum(h2 + res, 0.0)

        lookback -= 2 * p
        if lookback > 0:
            out = mask_negative(out, lookback)      # causal pad for next block
        a = out

    o_ref[0] = a.astype(o_ref.dtype)


# -------------------------------- wrapper ------------------------------------

def tcn_forward(x, params, kernel_size, *, max_tile_t=512,
                compute_dtype=jnp.float32):
    """x: (B, C0, T) float32.  params: list of dicts with PyTorch Conv1d layouts
    (w1/w2: (Cout, Cin, K), b: (Cout,), wd: (Cout, Cin) or None)."""
    B, C0, T = x.shape
    K = kernel_size

    layers = []
    cin = C0
    halo = 0                                    # receptive_field - 1 of the stack
    for i, p in enumerate(params):
        cout = p["w1"].shape[0]
        d = 2 ** i
        layers.append((cin, cout, d, p["wd"] is not None))
        halo += 2 * (K - 1) * d
        cin = cout
    c_last = cin

    # Time tiling: lane-dense tiles (multiple of 128) or the full sequence.
    if T <= max_tile_t:
        tile_t, t_pad = T, T
    else:
        tile_t = max_tile_t
        t_pad = ((T + tile_t - 1) // tile_t) * tile_t
    nt = t_pad // tile_t

    # Left pad = causal zero padding for the whole stack; right pad to a tile
    # multiple (causal conv => padded tail never affects kept outputs).
    xp = jnp.pad(x.astype(jnp.float32), ((0, 0), (0, 0), (halo, t_pad - T)))

    flat_args = []
    in_specs = [pl.BlockSpec((1, C0, halo + t_pad), lambda b, t: (b, 0, 0))]
    for p, (ci, co, d, has_ds) in zip(params, layers):
        # Stack taps along the contraction axis: (Cout, K*Cin), tap-major cols.
        w1s = jnp.transpose(p["w1"], (0, 2, 1)).reshape(co, K * ci)
        w2s = jnp.transpose(p["w2"], (0, 2, 1)).reshape(co, K * co)
        flat_args += [w1s.astype(compute_dtype),
                      p["b1"].reshape(co, 1).astype(jnp.float32),
                      w2s.astype(compute_dtype),
                      p["b2"].reshape(co, 1).astype(jnp.float32)]
        in_specs += [pl.BlockSpec((co, K * ci), lambda b, t: (0, 0)),
                     pl.BlockSpec((co, 1), lambda b, t: (0, 0)),
                     pl.BlockSpec((co, K * co), lambda b, t: (0, 0)),
                     pl.BlockSpec((co, 1), lambda b, t: (0, 0))]
        if has_ds:
            flat_args += [p["wd"].astype(compute_dtype),
                          p["bd"].reshape(co, 1).astype(jnp.float32)]
            in_specs += [pl.BlockSpec((co, ci), lambda b, t: (0, 0)),
                         pl.BlockSpec((co, 1), lambda b, t: (0, 0))]

    kernel = functools.partial(_tcn_kernel, layers=tuple(layers), K=K,
                               tile_t=tile_t, halo=halo, nt=nt)

    flops = 2 * B * t_pad * sum(
        K * ci * co + K * co * co + (ci * co if hd else 0)
        for (ci, co, d, hd) in layers)
    bytes_accessed = 4 * (int(xp.size) + B * c_last * t_pad) + sum(
        int(a.size) * a.dtype.itemsize for a in flat_args)

    out = pl.pallas_call(
        kernel,
        out_shape=jax.ShapeDtypeStruct((B, c_last, t_pad), jnp.float32),
        grid=(B, nt),
        in_specs=in_specs,
        out_specs=pl.BlockSpec((1, c_last, tile_t), lambda b, t: (b, 0, t)),
        compiler_params=pltpu.CompilerParams(
            dimension_semantics=("parallel", "parallel"),
            vmem_limit_bytes=48 * 1024 * 1024),
        cost_estimate=pl.CostEstimate(flops=int(flops), transcendentals=0,
                                      bytes_accessed=int(bytes_accessed)),
    )(xp, *flat_args)
    return out[:, :, :T]


# ------------------------- parameter construction ----------------------------

def init_tcn_params(key, num_inputs, num_channels, kernel_size, scale=0.01):
    params = []
    for i, out_ch in enumerate(num_channels):
        in_ch = num_inputs if i == 0 else num_channels[i - 1]
        key, k1, k2, k3, k4, k5, k6 = jax.random.split(key, 7)
        w1 = scale * jax.random.normal(k1, (out_ch, in_ch, kernel_size), jnp.float32)
        b1 = scale * jax.random.normal(k2, (out_ch,), jnp.float32)
        w2 = scale * jax.random.normal(k3, (out_ch, out_ch, kernel_size), jnp.float32)
        b2 = scale * jax.random.normal(k4, (out_ch,), jnp.float32)
        if in_ch != out_ch:
            wd = scale * jax.random.normal(k5, (out_ch, in_ch), jnp.float32)
            bd = scale * jax.random.normal(k6, (out_ch,), jnp.float32)
        else:
            wd, bd = None, None
        params.append(dict(w1=w1, b1=b1, w2=w2, b2=b2, wd=wd, bd=bd))
    return params


def _quantize_bf16(tree):
    # Test helper: snap values to the bf16 grid so that the comparison is
    # insensitive to the backend's default matmul precision choice.
    return jax.tree.map(
        lambda a: None if a is None else a.astype(jnp.bfloat16).astype(jnp.float32),
        tree, is_leaf=lambda a: a is None)


# ------------------------------ pure-JAX ref ----------------------------------

def _ref_causal_conv(x, w, b, d):
    # x: (B, Cin, T), w: (Cout, Cin, K)
    K = w.shape[-1]
    T = x.shape[-1]
    pad = (K - 1) * d
    xp = jnp.pad(x, ((0, 0), (0, 0), (pad, 0)))
    out = b[None, :, None]
    for j in range(K):
        out = out + jnp.einsum("oi,bit->bot", w[:, :, j],
                               xp[:, :, j * d: j * d + T])
    return out


def tcn_forward_ref(x, params, kernel_size):
    out = x
    for i, p in enumerate(params):
        d = 2 ** i
        h = jnp.maximum(_ref_causal_conv(out, p["w1"], p["b1"], d), 0.0)
        h = jnp.maximum(_ref_causal_conv(h, p["w2"], p["b2"], d), 0.0)
        if p["wd"] is None:
            res = out
        else:
            res = jnp.einsum("oi,bit->bot", p["wd"], out) + p["bd"][None, :, None]
        out = jnp.maximum(h + res, 0.0)
    return out


# --------------------------------- main ---------------------------------------

if __name__ == "__main__":
    key = jax.random.PRNGKey(0)

    # --- Test 1: small demo config (single time tile) -------------------------
    key, kx, kp = jax.random.split(key, 3)
    B, C0, T = 2, 4, 16
    num_channels, K = [8, 8], 2
    x = _quantize_bf16(jax.random.normal(kx, (B, C0, T), jnp.float32))
    params = _quantize_bf16(init_tcn_params(kp, C0, num_channels, K, scale=0.1))

    out = jax.block_until_ready(tcn_forward(x, params, K))
    ref = jax.block_until_ready(tcn_forward_ref(x, params, K))
    np.testing.assert_allclose(np.asarray(out), np.asarray(ref),
                               rtol=2e-2, atol=3e-3)

    # --- Test 2: multi-tile time axis (exercises the halo'd T-tiling) ---------
    key, kx2, kp2 = jax.random.split(key, 3)
    B2, C02, T2 = 2, 6, 400
    num_channels2, K2 = [16, 16, 16], 3
    x2 = _quantize_bf16(jax.random.normal(kx2, (B2, C02, T2), jnp.float32))
    params2 = _quantize_bf16(init_tcn_params(kp2, C02, num_channels2, K2, scale=0.1))

    out2 = jax.block_until_ready(tcn_forward(x2, params2, K2, max_tile_t=128))
    ref2 = jax.block_until_ready(tcn_forward_ref(x2, params2, K2))
    np.testing.assert_allclose(np.asarray(out2), np.asarray(ref2),
                               rtol=2e-2, atol=3e-3)

    print("KERNEL_OK")
</pallas_src>

<mosaic_0001>
module attributes {stable_mosaic.version = 11 : i64} {
  func.func @_tcn_kernel(%arg0: i32, %arg1: i32, %arg2: memref<1x4x22xf32, #tpu.memory_space<vmem>>, %arg3: memref<8x8xf32, #tpu.memory_space<vmem>>, %arg4: memref<8x1xf32, #tpu.memory_space<vmem>>, %arg5: memref<8x16xf32, #tpu.memory_space<vmem>>, %arg6: memref<8x1xf32, #tpu.memory_space<vmem>>, %arg7: memref<8x4xf32, #tpu.memory_space<vmem>>, %arg8: memref<8x1xf32, #tpu.memory_space<vmem>>, %arg9: memref<8x16xf32, #tpu.memory_space<vmem>>, %arg10: memref<8x1xf32, #tpu.memory_space<vmem>>, %arg11: memref<8x16xf32, #tpu.memory_space<vmem>>, %arg12: memref<8x1xf32, #tpu.memory_space<vmem>>, %arg13: memref<1x8x16xf32, #tpu.memory_space<vmem>>) attributes {dimension_semantics = [#tpu.dimension_semantics<parallel>, #tpu.dimension_semantics<parallel>], iteration_bounds = array<i64: 2, 1>, scalar_prefetch = 0 : i64, scratch_operands = 0 : i64, tpu.core_type = #tpu.core_type<tc>, window_params = [{transform_indices = @transform_0, window_bounds = array<i64: 1, 4, 22>}, {pipeline_mode = #tpu.pipeline_mode<synchronous>, transform_indices = @transform_1, window_bounds = array<i64: 8, 8>}, {pipeline_mode = #tpu.pipeline_mode<synchronous>, transform_indices = @transform_2, window_bounds = array<i64: 8, 1>}, {pipeline_mode = #tpu.pipeline_mode<synchronous>, transform_indices = @transform_3, window_bounds = array<i64: 8, 16>}, {pipeline_mode = #tpu.pipeline_mode<synchronous>, transform_indices = @transform_4, window_bounds = array<i64: 8, 1>}, {pipeline_mode = #tpu.pipeline_mode<synchronous>, transform_indices = @transform_5, window_bounds = array<i64: 8, 4>}, {pipeline_mode = #tpu.pipeline_mode<synchronous>, transform_indices = @transform_6, window_bounds = array<i64: 8, 1>}, {pipeline_mode = #tpu.pipeline_mode<synchronous>, transform_indices = @transform_7, window_bounds = array<i64: 8, 16>}, {pipeline_mode = #tpu.pipeline_mode<synchronous>, transform_indices = @transform_8, window_bounds = array<i64: 8, 1>}, {pipeline_mode = #tpu.pipeline_mode<synchronous>, transform_indices = @transform_9, window_bounds = array<i64: 8, 16>}, {pipeline_mode = #tpu.pipeline_mode<synchronous>, transform_indices = @transform_10, window_bounds = array<i64: 8, 1>}, {transform_indices = @transform_11, window_bounds = array<i64: 1, 8, 16>}]} {
    %c0 = arith.constant 0 : index
    %c0_0 = arith.constant 0 : index
    %c0_1 = arith.constant 0 : index
    %0 = vector.load %arg2[%c0, %c0_0, %c0_1] : memref<1x4x22xf32, #tpu.memory_space<vmem>>, vector<1x4x22xf32>
    %1 = vector.shape_cast %0 : vector<1x4x22xf32> to vector<4x22xf32>
    %c0_2 = arith.constant 0 : index
    %c0_3 = arith.constant 0 : index
    %2 = vector.load %arg3[%c0_2, %c0_3] : memref<8x8xf32, #tpu.memory_space<vmem>>, vector<8x8xf32>
    %c0_4 = arith.constant 0 : index
    %c0_5 = arith.constant 0 : index
    %3 = vector.load %arg4[%c0_4, %c0_5] : memref<8x1xf32, #tpu.memory_space<vmem>>, vector<8x1xf32>
    %c0_6 = arith.constant 0 : index
    %c0_7 = arith.constant 0 : index
    %4 = vector.load %arg5[%c0_6, %c0_7] : memref<8x16xf32, #tpu.memory_space<vmem>>, vector<8x16xf32>
    %c0_8 = arith.constant 0 : index
    %c0_9 = arith.constant 0 : index
    %5 = vector.load %arg6[%c0_8, %c0_9] : memref<8x1xf32, #tpu.memory_space<vmem>>, vector<8x1xf32>
    %c0_10 = arith.constant 0 : index
    %c0_11 = arith.constant 0 : index
    %6 = vector.load %arg7[%c0_10, %c0_11] : memref<8x4xf32, #tpu.memory_space<vmem>>, vector<8x4xf32>
    %c0_12 = arith.constant 0 : index
    %c0_13 = arith.constant 0 : index
    %7 = vector.load %arg8[%c0_12, %c0_13] : memref<8x1xf32, #tpu.memory_space<vmem>>, vector<8x1xf32>
    %8 = vector.extract_strided_slice %1 {offsets = [0, 0], sizes = [4, 21], strides = [1, 1]} : vector<4x22xf32> to vector<4x21xf32>
    %9 = vector.extract_strided_slice %1 {offsets = [0, 1], sizes = [4, 21], strides = [1, 1]} : vector<4x22xf32> to vector<4x21xf32>
    %10 = tpu.concatenate %8, %9 in 0 : vector<4x21xf32>, vector<4x21xf32> -> vector<8x21xf32>
    %cst = arith.constant dense<0.000000e+00> : vector<8x21xf32>
    %11 = tpu.matmul %2, %10, %cst {dimension_numbers = #tpu.dot_dimension_numbers<[1], [0], [0], [1], [0, 0, 1, 1], [], []>} : vector<8x8xf32>, vector<8x21xf32>, vector<8x21xf32> -> vector<8x21xf32>
    %12 = vector.broadcast %3 : vector<8x1xf32> to vector<8x21xf32>
    %13 = arith.addf %11, %12 : vector<8x21xf32>
    %cst_14 = arith.constant 0.000000e+00 : f32
    %14 = vector.broadcast %cst_14 : f32 to vector<8x21xf32>
    %15 = arith.maximumf %13, %14 : vector<8x21xf32>
    %16 = tpu.iota {dimensions = array<i32: 1>} : vector<8x21xi32>
    %c-5_i32 = arith.constant -5 : i32
    %17 = vector.broadcast %c-5_i32 : i32 to vector<8x21xi32>
    %18 = arith.addi %17, %16 : vector<8x21xi32>
    %c0_i32 = arith.constant 0 : i32
    %19 = vector.broadcast %c0_i32 : i32 to vector<8x21xi32>
    %20 = arith.cmpi sge, %18, %19 : vector<8x21xi32>
    %cst_15 = arith.constant 0.000000e+00 : f32
    %21 = vector.broadcast %cst_15 : f32 to vector<8x21xf32>
    %22 = arith.select %20, %15, %21 : vector<8x21xi1>, vector<8x21xf32>
    %23 = vector.extract_strided_slice %22 {offsets = [0, 0], sizes = [8, 20], strides = [1, 1]} : vector<8x21xf32> to vector<8x20xf32>
    %24 = vector.extract_strided_slice %22 {offsets = [0, 1], sizes = [8, 20], strides = [1, 1]} : vector<8x21xf32> to vector<8x20xf32>
    %25 = tpu.concatenate %23, %24 in 0 : vector<8x20xf32>, vector<8x20xf32> -> vector<16x20xf32>
    %cst_16 = arith.constant dense<0.000000e+00> : vector<8x20xf32>
    %26 = tpu.matmul %4, %25, %cst_16 {dimension_numbers = #tpu.dot_dimension_numbers<[1], [0], [0], [1], [0, 0, 1, 1], [], []>} : vector<8x16xf32>, vector<16x20xf32>, vector<8x20xf32> -> vector<8x20xf32>
    %27 = vector.broadcast %5 : vector<8x1xf32> to vector<8x20xf32>
    %28 = arith.addf %26, %27 : vector<8x20xf32>
    %cst_17 = arith.constant 0.000000e+00 : f32
    %29 = vector.broadcast %cst_17 : f32 to vector<8x20xf32>
    %30 = arith.maximumf %28, %29 : vector<8x20xf32>
    %31 = vector.extract_strided_slice %1 {offsets = [0, 2], sizes = [4, 20], strides = [1, 1]} : vector<4x22xf32> to vector<4x20xf32>
    %cst_18 = arith.constant dense<0.000000e+00> : vector<8x20xf32>
    %32 = tpu.matmul %6, %31, %cst_18 {dimension_numbers = #tpu.dot_dimension_numbers<[1], [0], [0], [1], [0, 0, 1, 1], [], []>} : vector<8x4xf32>, vector<4x20xf32>, vector<8x20xf32> -> vector<8x20xf32>
    %33 = vector.broadcast %7 : vector<8x1xf32> to vector<8x20xf32>
    %34 = arith.addf %32, %33 : vector<8x20xf32>
    %35 = arith.addf %30, %34 : vector<8x20xf32>
    %cst_19 = arith.constant 0.000000e+00 : f32
    %36 = vector.broadcast %cst_19 : f32 to vector<8x20xf32>
    %37 = arith.maximumf %35, %36 : vector<8x20xf32>
    %38 = tpu.iota {dimensions = array<i32: 1>} : vector<8x20xi32>
    %c-4_i32 = arith.constant -4 : i32
    %39 = vector.broadcast %c-4_i32 : i32 to vector<8x20xi32>
    %40 = arith.addi %39, %38 : vector<8x20xi32>
    %c0_i32_20 = arith.constant 0 : i32
    %41 = vector.broadcast %c0_i32_20 : i32 to vector<8x20xi32>
    %42 = arith.cmpi sge, %40, %41 : vector<8x20xi32>
    %cst_21 = arith.constant 0.000000e+00 : f32
    %43 = vector.broadcast %cst_21 : f32 to vector<8x20xf32>
    %44 = arith.select %42, %37, %43 : vector<8x20xi1>, vector<8x20xf32>
    %c0_22 = arith.constant 0 : index
    %c0_23 = arith.constant 0 : index
    %45 = vector.load %arg9[%c0_22, %c0_23] : memref<8x16xf32, #tpu.memory_space<vmem>>, vector<8x16xf32>
    %c0_24 = arith.constant 0 : index
    %c0_25 = arith.constant 0 : index
    %46 = vector.load %arg10[%c0_24, %c0_25] : memref<8x1xf32, #tpu.memory_space<vmem>>, vector<8x1xf32>
    %c0_26 = arith.constant 0 : index
    %c0_27 = arith.constant 0 : index
    %47 = vector.load %arg11[%c0_26, %c0_27] : memref<8x16xf32, #tpu.memory_space<vmem>>, vector<8x16xf32>
    %c0_28 = arith.constant 0 : index
    %c0_29 = arith.constant 0 : index
    %48 = vector.load %arg12[%c0_28, %c0_29] : memref<8x1xf32, #tpu.memory_space<vmem>>, vector<8x1xf32>
    %49 = vector.extract_strided_slice %44 {offsets = [0, 0], sizes = [8, 18], strides = [1, 1]} : vector<8x20xf32> to vector<8x18xf32>
    %50 = vector.extract_strided_slice %44 {offsets = [0, 2], sizes = [8, 18], strides = [1, 1]} : vector<8x20xf32> to vector<8x18xf32>
    %51 = tpu.concatenate %49, %50 in 0 : vector<8x18xf32>, vector<8x18xf32> -> vector<16x18xf32>
    %cst_30 = arith.constant dense<0.000000e+00> : vector<8x18xf32>
    %52 = tpu.matmul %45, %51, %cst_30 {dimension_numbers = #tpu.dot_dimension_numbers<[1], [0], [0], [1], [0, 0, 1, 1], [], []>} : vector<8x16xf32>, vector<16x18xf32>, vector<8x18xf32> -> vector<8x18xf32>
    %53 = vector.broadcast %46 : vector<8x1xf32> to vector<8x18xf32>
    %54 = arith.addf %52, %53 : vector<8x18xf32>
    %cst_31 = arith.constant 0.000000e+00 : f32
    %55 = vector.broadcast %cst_31 : f32 to vector<8x18xf32>
    %56 = arith.maximumf %54, %55 : vector<8x18xf32>
    %57 = tpu.iota {dimensions = array<i32: 1>} : vector<8x18xi32>
    %c-2_i32 = arith.constant -2 : i32
    %58 = vector.broadcast %c-2_i32 : i32 to vector<8x18xi32>
    %59 = arith.addi %58, %57 : vector<8x18xi32>
    %c0_i32_32 = arith.constant 0 : i32
    %60 = vector.broadcast %c0_i32_32 : i32 to vector<8x18xi32>
    %61 = arith.cmpi sge, %59, %60 : vector<8x18xi32>
    %cst_33 = arith.constant 0.000000e+00 : f32
    %62 = vector.broadcast %cst_33 : f32 to vector<8x18xf32>
    %63 = arith.select %61, %56, %62 : vector<8x18xi1>, vector<8x18xf32>
    %64 = vector.extract_strided_slice %63 {offsets = [0, 0], sizes = [8, 16], strides = [1, 1]} : vector<8x18xf32> to vector<8x16xf32>
    %65 = vector.extract_strided_slice %63 {offsets = [0, 2], sizes = [8, 16], strides = [1, 1]} : vector<8x18xf32> to vector<8x16xf32>
    %66 = tpu.concatenate %64, %65 in 0 : vector<8x16xf32>, vector<8x16xf32> -> vector<16x16xf32>
    %cst_34 = arith.constant dense<0.000000e+00> : vector<8x16xf32>
    %67 = tpu.matmul %47, %66, %cst_34 {dimension_numbers = #tpu.dot_dimension_numbers<[1], [0], [0], [1], [0, 0, 1, 1], [], []>} : vector<8x16xf32>, vector<16x16xf32>, vector<8x16xf32> -> vector<8x16xf32>
    %68 = vector.broadcast %48 : vector<8x1xf32> to vector<8x16xf32>
    %69 = arith.addf %67, %68 : vector<8x16xf32>
    %cst_35 = arith.constant 0.000000e+00 : f32
    %70 = vector.broadcast %cst_35 : f32 to vector<8x16xf32>
    %71 = arith.maximumf %69, %70 : vector<8x16xf32>
    %72 = vector.extract_strided_slice %44 {offsets = [0, 4], sizes = [8, 16], strides = [1, 1]} : vector<8x20xf32> to vector<8x16xf32>
    %73 = arith.addf %71, %72 : vector<8x16xf32>
    %cst_36 = arith.constant 0.000000e+00 : f32
    %74 = vector.broadcast %cst_36 : f32 to vector<8x16xf32>
    %75 = arith.maximumf %73, %74 : vector<8x16xf32>
    %c0_37 = arith.constant 0 : index
    %c0_38 = arith.constant 0 : index
    %c0_39 = arith.constant 0 : index
    %76 = vector.load %arg13[%c0_37, %c0_38, %c0_39] : memref<1x8x16xf32, #tpu.memory_space<vmem>>, vector<1x8x16xf32>
    %77 = vector.shape_cast %76 : vector<1x8x16xf32> to vector<8x16xf32>
    %78 = vector.shape_cast %75 : vector<8x16xf32> to vector<1x8x16xf32>
    tpu.vector_store %arg13[%c0_37, %c0_38, %c0_39], %78 {strides = array<i32>} : memref<1x8x16xf32, #tpu.memory_space<vmem>>, vector<1x8x16xf32>,
    return
  }
  func.func @transform_0(%arg0: i32, %arg1: i32) -> (i32, i32, i32) {
    %c0_i32 = arith.constant 0 : i32
    %c0_i32_0 = arith.constant 0 : i32
    %c0_i32_1 = arith.constant 0 : i32
    return %arg0, %c0_i32, %c0_i32_0 : i32, i32, i32
  }
  func.func @transform_1(%arg0: i32, %arg1: i32) -> (i32, i32) {
    %c0_i32 = arith.constant 0 : i32
    %c0_i32_0 = arith.constant 0 : i32
    %c0_i32_1 = arith.constant 0 : i32
    return %c0_i32, %c0_i32_0 : i32, i32
  }
  func.func @transform_2(%arg0: i32, %arg1: i32) -> (i32, i32) {
    %c0_i32 = arith.constant 0 : i32
    %c0_i32_0 = arith.constant 0 : i32
    %c0_i32_1 = arith.constant 0 : i32
    return %c0_i32, %c0_i32_0 : i32, i32
  }
  func.func @transform_3(%arg0: i32, %arg1: i32) -> (i32, i32) {
    %c0_i32 = arith.constant 0 : i32
    %c0_i32_0 = arith.constant 0 : i32
    %c0_i32_1 = arith.constant 0 : i32
    return %c0_i32, %c0_i32_0 : i32, i32
  }
  func.func @transform_4(%arg0: i32, %arg1: i32) -> (i32, i32) {
    %c0_i32 = arith.constant 0 : i32
    %c0_i32_0 = arith.constant 0 : i32
    %c0_i32_1 = arith.constant 0 : i32
    return %c0_i32, %c0_i32_0 : i32, i32
  }
  func.func @transform_5(%arg0: i32, %arg1: i32) -> (i32, i32) {
    %c0_i32 = arith.constant 0 : i32
    %c0_i32_0 = arith.constant 0 : i32
    %c0_i32_1 = arith.constant 0 : i32
    return %c0_i32, %c0_i32_0 : i32, i32
  }
  func.func @transform_6(%arg0: i32, %arg1: i32) -> (i32, i32) {
    %c0_i32 = arith.constant 0 : i32
    %c0_i32_0 = arith.constant 0 : i32
    %c0_i32_1 = arith.constant 0 : i32
    return %c0_i32, %c0_i32_0 : i32, i32
  }
  func.func @transform_7(%arg0: i32, %arg1: i32) -> (i32, i32) {
    %c0_i32 = arith.constant 0 : i32
    %c0_i32_0 = arith.constant 0 : i32
    %c0_i32_1 = arith.constant 0 : i32
    return %c0_i32, %c0_i32_0 : i32, i32
  }
  func.func @transform_8(%arg0: i32, %arg1: i32) -> (i32, i32) {
    %c0_i32 = arith.constant 0 : i32
    %c0_i32_0 = arith.constant 0 : i32
    %c0_i32_1 = arith.constant 0 : i32
    return %c0_i32, %c0_i32_0 : i32, i32
  }
  func.func @transform_9(%arg0: i32, %arg1: i32) -> (i32, i32) {
    %c0_i32 = arith.constant 0 : i32
    %c0_i32_0 = arith.constant 0 : i32
    %c0_i32_1 = arith.constant 0 : i32
    return %c0_i32, %c0_i32_0 : i32, i32
  }
  func.func @transform_10(%arg0: i32, %arg1: i32) -> (i32, i32) {
    %c0_i32 = arith.constant 0 : i32
    %c0_i32_0 = arith.constant 0 : i32
    %c0_i32_1 = arith.constant 0 : i32
    return %c0_i32, %c0_i32_0 : i32, i32
  }
  func.func @transform_11(%arg0: i32, %arg1: i32) -> (i32, i32, i32) {
    %c0_i32 = arith.constant 0 : i32
    %c0_i32_0 = arith.constant 0 : i32
    return %arg0, %c0_i32, %arg1 : i32, i32, i32
  }
}

</mosaic_0001>

<bundles_post_ra>
// kernel: tpu_custom_call.1
= control target key start
LH: loop header
LB: loop body
LE: loop exit
PB: predicated region body
PF: predicated region fallthrough
CT: control target
= control target key end

     0   :  { %16 = vsyncpa [#allocation3], 0  ;;  %s1387_s0 = inlined_call_operand.vmem [shape: f32[2,4,22], index: 0, kind: input, shape index: {}]   ;;  %s1388_s1 = inlined_call_operand.vmem [shape: f32[8,8], index: 1, kind: input, shape index: {}]   ;;  %s1389_s2 = inlined_call_operand.vmem [shape: f32[8,1], index: 2, kind: input, shape index: {}]   ;;  %s1390_s3 = inlined_call_operand.vmem [shape: f32[8,16], index: 3, kind: input, shape index: {}]   ;;  %s1391_s4 = inlined_call_operand.vmem [shape: f32[8,1], index: 4, kind: input, shape index: {}]   ;;  %s1392_s5 = inlined_call_operand.vmem [shape: f32[8,4], index: 5, kind: input, shape index: {}]   ;;  %s1393_s6 = inlined_call_operand.vmem [shape: f32[8,1], index: 6, kind: input, shape index: {}]   ;;  %s1394_s7 = inlined_call_operand.vmem [shape: f32[8,16], index: 7, kind: input, shape index: {}]   ;;  %s1395_s8 = inlined_call_operand.vmem [shape: f32[8,1], index: 8, kind: input, shape index: {}]   ;;  %s1396_s9 = inlined_call_operand.vmem [shape: f32[8,16], index: 9, kind: input, shape index: {}]   ;;  %s1397_s10 = inlined_call_operand.vmem [shape: f32[8,1], index: 10, kind: input, shape index: {}]   ;;  %s1398_s11 = inlined_call_operand.hbm [shape: f32[2,8,16], index: 11, kind: output, shape index: {}]  }
   0x1   :  { %18 = vsyncpa [#allocation3 + $0x1], 0  ;;  %s1219_s17 = smov 0   ;;  %s1221_s18 = smov 0  }
   0x2   :  { %s1223_s19 = smov 0   ;;  %s1225_s20 = smov 0  }
   0x3   :  { %s1227_s21 = smov 0   ;;  %s1229_s22 = smov 0  }
   0x4 LB: > { %1401 = sst [smem:[#allocation5_spill]] %s1144_s21  ;;  %s929_s23 = sadd.s32 4294967295, %s1148_s22   ;;  %s1148_s22 = sphi %s1229_s22, %s24_s22   ;;  %s1144_s21 = sphi %s1227_s21, %s1406_s21   ;;  %s1140_s20 = sphi %s1225_s20, %s1405_s20   ;;  %s1136_s19 = sphi %s1223_s19, %s1409_s19   ;;  %s1132_s18 = sphi %s1221_s18, %s1408_s18   ;;  %s1128_s17 = sphi %s1219_s17, %s1407_s17  }
   0x5   : > { %s930_s24 = sadd.s32 4294967294, %s1148_s22   ;;  %s36_s25 = sadd.s32 1, %s1144_s21 }
   0x6   : > { %s281_s26 = sadd.s32 1, %s1136_s19  ;;  %p38_p0 = scmp.ge.s32.totalorder %s36_s25, 2 }
   0x7   : > { %p291_p1 = scmp.ne.s32.totalorder %s1136_s19, %s1132_s18  ;;  %p292_p2 = scmp.eq.s32.totalorder %s929_s23, 1 }
   0x8   : > { %p297_p3 = scmp.ne.s32.totalorder %s1132_s18, %s1128_s17  ;;  %s1411_s25 = smov (%p38_p0, %s36_s25), 0 }
   0x9   : > { %1402 = sst [smem:[#allocation6_spill]] %s1411_s25  ;;  %p1259_p4 = por %p292_p2, %p291_p1 }
   0xa   : > { %p298_p5 = scmp.eq.s32.totalorder %s930_s24, 1  ;;  %s276_s28 = ssub.s32 %s1144_s21, %s1411_s25 }
   0xb   : > { %p933_p6 = scmp.ge.s32.totalorder %s1148_s22, 1  ;;  %p279_p7 = scmp.eq.s32.totalorder %s276_s28, 0 }
   0xc   : > { %p1266_p8 = por %p298_p5, %p297_p3  ;;  %p353_p9 = scmp.lt.s32.totalorder %s1148_s22, 3 }
   0xd   : > { %s1272_s30 = scalar_select %p279_p7, %s1136_s19, %s281_s26  }
   0xe   : > { %p354_p10 = pnand %p933_p6, %p353_p9 }
   0xf   : > { %p392_p11 = scmp.lt.s32.totalorder (!%p354_p10), %s1140_s20, 1  ;;  %v1150_v0 = vmov (!%p354_p10), 0.0   ;;  %vm1151_vm0 = vmmov (!%p354_p10), 0   ;;  %v1152_v1 = vmov (!%p354_p10), 0   ;;  %s1153_s23 = smov (!%p354_p10), 127   ;;  %v398_v4 = vld [vmem:[%s1389_s2] sm:$0xff] (!%p354_p10)  ;;  %v490_v11 = vlaneseq (!%p354_p10) }
  0x10   : > { %357 = sbr.rel (%p354_p10) target bundleno = 1396 (0x574), region = 64  ;;  %962 = vmatprep.subr.mxu0 (!%p354_p10), %v1150_v0  ;;  %964 = vmatprep.mubr.msk.f32.mxu0 (!%p354_p10), %vm1151_vm0, %v1150_v0  ;;  %v402_v5 = vld [vmem:[%s1393_s6] sm:$0xff] (!%p354_p10)  ;;  %vm408_vm1 = vcmask (!%p354_p10), 1043456   ;;  %vm415_vm2 = vcmask (!%p354_p10), 64512   ;;  %v1154_v13 = vmov (!%p354_p10), 0.0|0.0   ;;  %s1155_s21 = smov (!%p354_p10), 126  }
  0x11   : > { %1068 = vset.pattern.permute.xlu0 (!%p354_p10), %v1152_v1  ;;  %971 = vmatprep.mubr.msk.f32.mxu1 (!%p354_p10), %vm1151_vm0, %v1150_v0  ;;  %v668_v6 = vld [vmem:[%s1395_s8] sm:$0xff] (!%p354_p10)  ;;  %v491_v12 = vand.u32 (!%p354_p10), 127, %v490_v11  ;;  %vm1156_vm4 = vmmov (!%p354_p10), 1   ;;  %vm504_vm6 = vcmask (!%p354_p10), 130048   ;;  %vm586_vm7 = vcmask (!%p354_p10), 31744   ;;  %s1157_s15 = smov (!%p354_p10), 124  }
  0x12   : > { %1069 = vset.pattern.permute.xlu1 (!%p354_p10), %v1152_v1  ;;  %v670_v7 = vld [vmem:[%s1397_s10] sm:$0xff] (!%p354_p10)  ;;  %993 = vmatprep.subr.bf16.mxu1 (!%p354_p10), %v1154_v13  ;;  %s389_s24 = sand.u32 (!%p354_p10), 1, %s1132_s18  }
  0x13   : > { %v397_v9 = vld [vmem:[%s1388_s1] sm:$0xff] (!%p354_p10)  ;;  %v492_v14 = vadd.s32 (!%p354_p10), 4294967291, %v491_v12  ;;  %v664_v34 = vadd.s32 (!%p354_p10), 4294967292, %v491_v12  ;;  %v754_v43 = vadd.s32 (!%p354_p10), 4294967294, %v491_v12  ;;  %s934_s26 = sshll.u32 (!%p354_p10), %s389_s24, 3 }
  0x14   : > { %v400_v21 = vld [vmem:[%s1391_s4] sm:$0xff] (!%p354_p10)  ;;  %s391_s28 = scalar_lea.vmem (!%p354_p10), [#allocation2], %s934_s26 }
  0x15   : > { %vm493_vm3 = vcmp.ge.s32.totalorder (!%p354_p10), %v492_v14, 0  ;;  %v399_v24 = vld [vmem:[%s1390_s3] sm:$0xff] (!%p354_p10)  ;;  %vm665_vm8 = vcmp.ge.s32.totalorder (!%p354_p10), %v664_v34, 0  ;;  %vm755_vm10 = vcmp.ge.s32.totalorder (!%p354_p10), %v754_v43, 0 }
  0x16   : > { %vm995_vm5 = vmpackc.low (!%p354_p10), %vm1156_vm4, %vm493_vm3  ;;  %v401_v25 = vld [vmem:[%s1392_s5] sm:$0xff] (!%p354_p10) }
  0x17   : > { %s393_s12 = scalar_select %p392_p11, %s1140_s20, 1  ;;  %vm999_vm9 = vmpackc.low %vm1156_vm4, %vm665_vm8  ;;  %v667_v42 = vld [vmem:[%s1394_s7] sm:$0xff] }
  0x18   : > { %vm1003_vm11 = vmpackc.low %vm1156_vm4, %vm755_vm10  ;;  %v669_v52 = vld [vmem:[%s1396_s9] sm:$0xff] }
  0x19   : > { %s935_s13 = sshll.u32 %s393_s12, 2 }
  0x1a   : > { %s395_s16 = scalar_lea.vmem %s1387_s0, %s935_s13 }
  0x1b   : > { %v396_v2 = vld [vmem:[%s395_s16] sm:$0xf] }
  0x1c   : > { %v404_v3 = vrot.slane %v396_v2, 4 }
  0x1e   : > { %405 = vrot.lane.b32.xlu0 %v404_v3, %s1153_s23 }
  0x22   : > { %412 = vperm.xlu0 %1068, %v398_v4  }
  0x26   : > { %581 = vperm.xlu0 %1068, %v402_v5  }
  0x2a   : > { %677 = vperm.xlu0 %1068, %v668_v6  }
  0x2e   : > { %763 = vperm.xlu0 %1068, %v670_v7  }
  0x90   : > { %v406_v8 = vpop.permute.xlu0 %405 }
  0x91   : > { %v409_v10 = vsel %vm408_vm1, %v396_v2, %v406_v8 }
  0x92   : > { %963 = vmatpush3.msra.mxu0 %v409_v10 }
  0x93   : > { %965 = vmatmul.mubr.msk.f32.vlgmr.msra.gmra.mrb[0].mxu0 %vm415_vm2, %v397_v9  ;;  %974 = vmatprep.subr.mxu0 %v1150_v0 }
  0x94   : > { %976 = vmatprep.mubr.msk.f32.mxu0 %vm1151_vm0, %v1150_v0 }
  0xa1   : > { %v413_v15 = vpop.permute.xlu0 %412 }
  0xa5   : > { %v582_v33 = vpop.permute.xlu0 %581 }
  0xa9   : > { %v678_v44 = vpop.permute.xlu0 %677 }
  0xad   : > { %v764_v53 = vpop.permute.xlu0 %763 }
 0x166   : > { %v485_v16 = vpop.f32.mrb[0].mxu0 }
 0x167   : > { %v486_v17 = vadd.f32 %v485_v16, %v413_v15  ;;  %v966_v18 = vpop.f32.mrb[1].mxu0 }
 0x169   : > { %v489_v19 = vmax.f32 %v486_v17, 0.0 }
 0x16b   : > { %v494_v20 = vsel %vm493_vm3, %v489_v19, 0.0 }
 0x16c   : > { %496 = vrot.lane.b32.xlu1 %v494_v20, %s1153_s23  ;;  %s861_s23 = sshll.u32 %s391_s28, 4  ;;  %s1341_s23 = int_to_ptr.vmem [resolvable:$true] %s861_s23 }
 0x16d   : > { %s1070_s16 = scalar_lea.vmem %s1341_s23, 128 }
 0x16e   : > { %p1071_p12 = scmp.ne.s32.totalorder %s1341_s23, %s1070_s16 }
 0x170   : > { %584 = vrot.lane.b32.xlu1 %v396_v2, %s1155_s21  ;;  %p1072_p13 = pnand %p1071_p12, %p1259_p4 }
 0x172   : > { %p1073_p0 = pneg %p1072_p13 }
 0x174   : > { %501 = vperm.xlu1 %1069, %v400_v21  }
 0x1de   : > { %v497_v22 = vpop.permute.xlu1 %496 }
 0x1df   : > { %v994_v23 = vpack.c.bf16 %v497_v22, %v489_v19 }
 0x1e1   : > { %996 = vmatpush3.bf16.msk.msra.mxu1 %vm995_vm5, %v994_v23 }
 0x1e2   : > { %v585_v26 = vpop.permute.xlu1 %584  ;;  %997 = vmatprep.subr.bf16.mxu1 %v1154_v13 }
 0x1e3   : > { %975 = vmatpush3.msk.msra.mxu0 %vm408_vm1, %v585_v26 }
 0x1e4   : > { %972 = vmatmul.mubr.msk.f32.vlgmr.msra.gmra.mrb[0].mxu1 %vm504_vm6, %v399_v24  ;;  %977 = vmatmul.mubr.msk.f32.vlgmr.msra.gmra.mrb[2].mxu0 %vm586_vm7, %v401_v25 }
 0x1e5   : > { %983 = vmatprep.mubr.msk.f32.mxu1 %vm1151_vm0, %v1150_v0  ;;  %1001 = vmatprep.subr.bf16.mxu0 %v1154_v13 }
 0x1e6   : > { %990 = vmatprep.mubr.msk.f32.mxu0 %vm1151_vm0, %v1150_v0 }
 0x1f3   : > { %v502_v27 = vpop.permute.xlu1 %501 }
 0x2b7   : > { %v574_v28 = vpop.f32.mrb[0].mxu1  ;;  %v658_v29 = vpop.f32.mrb[2].mxu0 }
 0x2b8   : > { %v575_v30 = vadd.f32 %v574_v28, %v502_v27  ;;  %v973_v31 = vpop.f32.mrb[1].mxu1  ;;  %v978_v32 = vpop.f32.mrb[3].mxu0  ;;  %v659_v35 = vadd.f32 %v658_v29, %v582_v33 }
 0x2ba   : > { %v578_v36 = vmax.f32 %v575_v30, 0.0 }
 0x2bc   : > { %v662_v37 = vadd.f32 %v659_v35, %v578_v36 }
 0x2be   : > { %v663_v38 = vmax.f32 %v662_v37, 0.0 }
 0x2c0   : > { %v666_v39 = vsel %vm665_vm8, %v663_v38, 0.0 }
 0x2c1   : > { %672 = vrot.lane.b32.xlu1 %v666_v39, %s1155_s21 }
 0x333   : > { %v673_v40 = vpop.permute.xlu1 %672 }
 0x334   : > { %v998_v41 = vpack.c.bf16 %v673_v40, %v663_v38 }
 0x336   : > { %1000 = vmatpush3.bf16.msk.msra.mxu1 %vm999_vm9, %v998_v41 }
 0x339   : > { %984 = vmatmul.mubr.msk.f32.vlgmr.msra.gmra.mrb[2].mxu1 %vm504_vm6, %v667_v42 }
 0x40c   : > { %v749_v45 = vpop.f32.mrb[2].mxu1 }
 0x40d   : > { %v750_v46 = vadd.f32 %v749_v45, %v678_v44  ;;  %v985_v47 = vpop.f32.mrb[3].mxu1 }
 0x40f   : > { %v753_v48 = vmax.f32 %v750_v46, 0.0 }
 0x411   : > { %v756_v49 = vsel %vm755_vm10, %v753_v48, 0.0 }
 0x412   : > { %758 = vrot.lane.b32.xlu1 %v756_v49, %s1155_s21  ;;  %s946_s21 = sshll.u32 %s1140_s20, 7  ;;  %s1158_s20 = smov [#allocation2]  }
 0x413   : > { %s1339_s14 = scalar_lea.hbm %s1398_s11, %s946_s21  ;;  %s1074_s25 = sshll.u32 %s1158_s20, 4  ;;  %s1075_s25 = int_to_ptr.vmem [resolvable:$false] %s1074_s25 }
 0x414   : > { %s1076_s26 = scalar_lea.vmem %s1075_s25, 256  ;;  %p1077_p1 = scmp.lt.s32.totalorder %s1341_s23, %s1075_s25 }
 0x415   : > { %p1078_p2 = scmp.lt.s32.totalorder %s1076_s26, %s1070_s16 }
 0x416   : > { %840 = vrot.lane.b32.xlu1 %v666_v39, %s1157_s15  ;;  %s847_s15 = scalar_lea.sflag [#allocation3], %s389_s24 }
 0x417   : > { %p1079_p3 = por %p1078_p2, %p1077_p1 }
 0x419   : > { %p1080_p5 = pnand %p1079_p3, %p1073_p0 }
 0x484   : > { %v759_v50 = vpop.permute.xlu1 %758 }
 0x485   : > { %v1002_v51 = vpack.c.bf16 %v759_v50, %v753_v48 }
 0x487   : > { %1004 = vmatpush3.bf16.msk.msra.mxu0 %vm1003_vm11, %v1002_v51 }
 0x488   : > { %v841_v58 = vpop.permute.xlu1 %840 }
 0x48a   : > { %991 = vmatmul.mubr.msk.f32.vlgmr.msra.gmra.mrb[4].mxu0 %vm504_vm6, %v669_v52 }
 0x55d   : > { %v835_v54 = vpop.f32.mrb[4].mxu0 }
 0x55e   : > { %v836_v55 = vadd.f32 %v835_v54, %v764_v53  ;;  %v992_v56 = vpop.f32.mrb[5].mxu0 }
 0x560   : > { %v839_v57 = vmax.f32 %v836_v55, 0.0 }
 0x562   : > { %v843_v59 = vadd.f32 %v841_v58, %v839_v57 }
 0x564   : > { %v844_v60 = vmax.f32 %v843_v59, 0.0 }
 0x566   : > { %845 = vst.msk [vmem:[%s391_s28] sm:$0xff] %vm504_vm6, %v844_v60 }
 0x567   : > { %1083 = shalt.err (!%p1080_p5)
}
 0x568   : > { %s1084_s24 = scalar_lea.hbm %s1339_s14, 128  ;;  %s1088_s12 = scalar_lea.hbm %s1398_s11, 256 }
 0x569   : > { %p1085_p6 = scmp.ne.s32.totalorder %s1339_s14, %s1084_s24  ;;  %p1089_p10 = scmp.lt.u32.totalorder %s1339_s14, %s1398_s11 }
 0x56a   : > { %p1090_p11 = scmp.lt.u32.totalorder %s1088_s12, %s1084_s24  ;;  %p1092_p13 = scmp.lt.u32.totalorder %s1084_s24, %s1339_s14 }
 0x56b   : > { %p1086_p7 = pnand %p1085_p6, %p1259_p4 }
 0x56c   : > { %p1091_p12 = por %p1090_p11, %p1089_p10 }
 0x56d   : > { %p1087_p9 = pneg %p1086_p7 }
 0x56e   : > { %p1093_p0 = por %p1092_p13, %p1091_p12 }
 0x570   : > { %p1094_p1 = pnand %p1093_p0, %p1087_p9 }
 0x572   : > { %1097 = shalt.err (!%p1094_p1)
}
 0x573   : > { %1005 = dma.vmem_to_hbm [thread:$0]  (%p1259_p4), %s1341_s23, 128, %s1339_s14, %s847_s15  }
 0x574 PF: > { %p1011_p2 = scmp.ge.s32.totalorder %s1148_s22, 2  ;;  %s873_s16 = sand.u32 1, %s1128_s17  }
 0x575   : > { %s874_s25 = scalar_lea.sflag [#allocation3], %s873_s16 }
 0x576   : > { %p1008_p3 = pnand %p1011_p2, %p1266_p8 }
 0x578   : > { %1123 = dma.done.wait (!%p1008_p3), %s874_s25, 128  }
 0x579   : > { %1125 = vsyncadd (!%p1008_p3), %s874_s25, 4294967168  ;;  %s24_s22 = sadd.s32 1, %s1148_s22   ;;  %s1405_s20 = sld [smem:[#allocation5_spill]] }
 0x57a   : > { %p21_p5 = scmp.ge.s32.totalorder %s24_s22, 4   ;;  %s1406_s21 = sld [smem:[#allocation6_spill]] }
 0x57b   : > { %s1407_s17 = smov %s1132_s18  ;;  %s1408_s18 = smov %s1136_s19 }
 0x57c   : > { %s1409_s19 = smov %s1272_s30  ;;  %23 = sbr.rel (!%p21_p5) target bundleno = 4 (0x4), region = 99 }
 0x583   :  { %879 = vsyncpa [#allocation3], 1 }
 0x584   :  { %881 = vsyncpa [#allocation3 + $0x1], 1 }

</bundles_post_ra>
